<compile_context>
chip_gen: v6e
topology: v6e:2x2x1
jax: 0.10.0
libtpu: 0.0.40
codegen_flags: <defaults>
</compile_context>

<pallas_src>
import functools

import jax
import jax.numpy as jnp
from jax.experimental import pallas as pl
from jax.experimental.pallas import tpu as pltpu


def _round_up(x, m):
    return (x + m - 1) // m * m


def _cdiv(a, b):
    return (a + b - 1) // b


# ----------------------------------------------------------------------------
# Kernel 1: fused signed-BPR loss (the entire forward() hot path).
#   loss = -sum_{b,k} logsigmoid(coef_b * <u_b,v_b> - <u_b,n_{b,k}>)
#          + reg * (sum ||u||^2 + sum ||v||^2 + sum ||n||^2)
#   coef_b = -0.5*sign(w_b) + 1.5   (computed in-kernel from the (B,1) w)
# Grid = (num_shards, steps): shard axis is "parallel" (one per TensorCore on
# v7x), batch-tile axis is the "arbitrary" reduction carrying the per-shard
# accumulator resident in its own (1,8,128) output block.
# ----------------------------------------------------------------------------
def bpr_loss_kernel(u_ref, v_ref, w_ref, n_ref, o_ref, *,
                    num_neg, dim, reg, valid_rows, tile_rows,
                    steps_per_shard, masked):
    c = pl.program_id(0)          # shard (TensorCore) index
    i = pl.program_id(1)          # batch-tile index within the shard

    @pl.when(i == 0)
    def _init():
        o_ref[...] = jnp.zeros_like(o_ref)

    u = u_ref[...]                # [TB, D]
    v = v_ref[...]                # [TB, D]
    w = w_ref[...]                # [TB, 1]
    n = n_ref[...]                # [TB, K*D] lane-dense flattened negatives

    # Per-row coefficient applied AFTER the reduce (saves the (B,D) stream).
    coef = -0.5 * jnp.sign(w) + 1.5                               # [TB, 1]
    cpos = coef * jnp.sum(u * v, axis=1, keepdims=True)          # [TB, 1]

    # sum_k logsigmoid(coef*pos - <u, n_k>)   (K small -> static unroll)
    # NOTE: D=32 slices are lane-sparse; offloading these reductions to the
    # MXU is only worthwhile once the kernel stops being HBM-bound.
    row_sb = jnp.zeros_like(cpos)
    for k in range(num_neg):
        nk = n[:, k * dim:(k + 1) * dim]
        row_sb = row_sb + jax.nn.log_sigmoid(
            cpos - jnp.sum(u * nk, axis=1, keepdims=True))

    # ||u||^2 + ||v||^2 + sum_k ||n_k||^2   (per row)
    row_reg = (jnp.sum(u * u, axis=1, keepdims=True)
               + jnp.sum(v * v, axis=1, keepdims=True)
               + jnp.sum(n * n, axis=1, keepdims=True))

    row_total = reg * row_reg - row_sb                            # [TB, 1]

    if masked:   # static: only emitted when the batch was zero-padded
        row0 = (c * steps_per_shard + i) * tile_rows
        rows = row0 + jax.lax.broadcasted_iota(jnp.int32, (tile_rows, 1), 0)
        row_total = jnp.where(rows < valid_rows, row_total, 0.0)

    part = jnp.sum(row_total, axis=0, keepdims=True)              # (1, 1)
    o_ref[...] += jnp.broadcast_to(part.reshape(1, 1, 1), o_ref.shape)


def bpr_loss(u_, v_, w_, n2, num_neg, reg,
             max_tile_rows=2048, num_shards=2):
    B, D = u_.shape
    KD = n2.shape[1]

    rows_per_shard = _cdiv(B, num_shards)
    TB = min(max_tile_rows, _round_up(rows_per_shard, 8))
    steps = _cdiv(rows_per_shard, TB)
    B_pad = num_shards * steps * TB

    if B_pad != B:
        pad = ((0, B_pad - B), (0, 0))
        u_ = jnp.pad(u_, pad)
        v_ = jnp.pad(v_, pad)
        w_ = jnp.pad(w_, pad)
        n2 = jnp.pad(n2, pad)

    kernel = functools.partial(
        bpr_loss_kernel, num_neg=num_neg, dim=D, reg=float(reg),
        valid_rows=B, tile_rows=TB, steps_per_shard=steps,
        masked=(B_pad != B))

    out = pl.pallas_call(
        kernel,
        out_shape=jax.ShapeDtypeStruct((num_shards, 8, 128), jnp.float32),
        grid=(num_shards, steps),
        in_specs=[
            pl.BlockSpec((TB, D), lambda c, i: (c * steps + i, 0)),
            pl.BlockSpec((TB, D), lambda c, i: (c * steps + i, 0)),
            pl.BlockSpec((TB, 1), lambda c, i: (c * steps + i, 0)),
            pl.BlockSpec((TB, KD), lambda c, i: (c * steps + i, 0)),
        ],
        out_specs=pl.BlockSpec((1, 8, 128), lambda c, i: (c, 0, 0)),
        compiler_params=pltpu.CompilerParams(
            dimension_semantics=("parallel", "arbitrary")),
    )(u_, v_, w_, n2)
    # Per-shard partials (one per TensorCore on v7x) summed on the host side.
    return jnp.sum(out[:, 0, 0])


# ----------------------------------------------------------------------------
# Kernel 2: 2-layer MLP (z_n branch of aggregate()).  Its result is discarded
# by the reference module, so it is NOT called inside siren_forward(); kept
# here (row-tiled, weights resident) only for parity / standalone use.
#   z_n = relu( relu(E2 @ W0^T + b0) @ W1^T + b1 )   (dropout = identity)
# ----------------------------------------------------------------------------
def mlp_kernel(e2_ref, w0t_ref, b0_ref, w1t_ref, b1_ref, o_ref):
    x = e2_ref[...]
    h = jnp.dot(x, w0t_ref[...], preferred_element_type=jnp.float32) + b0_ref[...]
    h = jnp.maximum(h, 0.0)
    h = jnp.dot(h, w1t_ref[...], preferred_element_type=jnp.float32) + b1_ref[...]
    h = jnp.maximum(h, 0.0)
    o_ref[...] = h


def mlp_forward(E2, W0, b0, W1, b1, max_tile_rows=1024):
    R, D = E2.shape
    TR = min(max_tile_rows, _round_up(R, 8))
    R_pad = _round_up(R, TR)
    E2p = jnp.pad(E2, ((0, R_pad - R), (0, 0))) if R_pad != R else E2
    out = pl.pallas_call(
        mlp_kernel,
        out_shape=jax.ShapeDtypeStruct((R_pad, D), jnp.float32),
        grid=(R_pad // TR,),
        in_specs=[
            pl.BlockSpec((TR, D), lambda i: (i, 0)),
            pl.BlockSpec((D, D), lambda i: (0, 0)),
            pl.BlockSpec((1, D), lambda i: (0, 0)),
            pl.BlockSpec((D, D), lambda i: (0, 0)),
            pl.BlockSpec((1, D), lambda i: (0, 0)),
        ],
        out_specs=pl.BlockSpec((TR, D), lambda i: (i, 0)),
        compiler_params=pltpu.CompilerParams(
            dimension_semantics=("parallel",)),
    )(E2p, W0.T, b0.reshape(1, D), W1.T, b1.reshape(1, D))
    return out[:R]


# ----------------------------------------------------------------------------
# Module wrapper
# ----------------------------------------------------------------------------
@functools.partial(jax.jit, static_argnames=("reg",))
def siren_forward(params, u, v, w, n, reg=1e-4):
    # aggregate() computes graph-conv / MLP / attention but returns self.z;
    # the dead branch is not executed here.
    emb = params["z"]
    u_ = emb[u]                                  # [B, D]     (gather = glue)
    v_ = emb[v]                                  # [B, D]
    n_ = emb[n]                                  # [B, K, D]
    B, K, D = n_.shape

    w_ = w.astype(jnp.float32).reshape(B, 1)     # coef computed in-kernel
    n2 = n_.reshape(B, K * D)                    # lane-dense negatives
    return bpr_loss(u_, v_, w_, n2, K, reg)


def ref_forward(params, u, v, w, n, reg=1e-4):
    z = params["z"]
    u_, v_, n_ = z[u], z[v], z[n]
    pos = jnp.sum(u_ * v_, axis=1)
    neg = jnp.sum(u_[:, None, :] * n_, axis=2)
    coef = (-0.5 * jnp.sign(w) + 1.5)[:, None]
    sbpr = jnp.sum(jax.nn.log_sigmoid(coef * pos[:, None] - neg), axis=1)
    regl = jnp.sum(u_ ** 2) + jnp.sum(v_ ** 2) + jnp.sum(n_ ** 2)
    return -jnp.sum(sbpr) + reg * regl


def xavier_normal(key, shape):
    fan_out, fan_in = shape[0], shape[1]
    std = (2.0 / (fan_in + fan_out)) ** 0.5
    return std * jax.random.normal(key, shape, dtype=jnp.float32)


if __name__ == "__main__":
    M, N, D = 10, 14, 32          # num_u, num_v, embed dim
    B, K = 8, 4                   # batch size, negatives per positive
    REG = 1e-4

    key = jax.random.PRNGKey(0)
    keys = jax.random.split(key, 10)

    params = {
        # self.z: SignedGCN embedding (trained in __init__ in torch); here a
        # deterministic synthetic parameter of the same shape.
        "z": 0.1 * jax.random.normal(keys[0], (M + N, D), dtype=jnp.float32),
        "E": xavier_normal(keys[1], (M + N, D)),
        "E2": xavier_normal(keys[2], (M + N, D)),
        "mlp_w0": xavier_normal(keys[3], (D, D)),
        "mlp_b0": jnp.zeros((D,), jnp.float32),
        "mlp_w1": xavier_normal(keys[4], (D, D)),
        "mlp_b1": jnp.zeros((D,), jnp.float32),
    }

    u = jax.random.randint(keys[5], (B,), 0, M)             # user indices
    v = jax.random.randint(keys[6], (B,), M, M + N)         # positive items
    n = jax.random.randint(keys[7], (B, K), M, M + N)       # negative items
    w = jax.random.uniform(keys[8], (B,), minval=-1.0, maxval=5.0)  # ratings

    # Standalone exercise of the MLP kernel (dead in forward(); off hot path).
    z_n = mlp_forward(params["E2"], params["mlp_w0"], params["mlp_b0"],
                      params["mlp_w1"], params["mlp_b1"])
    jax.block_until_ready(z_n)

    loss = siren_forward(params, u, v, w, n, reg=REG)
    jax.block_until_ready(loss)

    expected = ref_forward(params, u, v, w, n, reg=REG)
    assert jnp.allclose(loss, expected, rtol=1e-4, atol=1e-3), (loss, expected)

    print("KERNEL_OK")
</pallas_src>

<mosaic_0001>
module attributes {stable_mosaic.version = 11 : i64} {
  func.func @mlp_kernel(%arg0: i32, %arg1: memref<24x32xf32, #tpu.memory_space<vmem>>, %arg2: memref<32x32xf32, #tpu.memory_space<vmem>>, %arg3: memref<1x32xf32, #tpu.memory_space<vmem>>, %arg4: memref<32x32xf32, #tpu.memory_space<vmem>>, %arg5: memref<1x32xf32, #tpu.memory_space<vmem>>, %arg6: memref<24x32xf32, #tpu.memory_space<vmem>>) attributes {dimension_semantics = [#tpu.dimension_semantics<parallel>], iteration_bounds = array<i64: 1>, scalar_prefetch = 0 : i64, scratch_operands = 0 : i64, tpu.core_type = #tpu.core_type<tc>, window_params = [{transform_indices = @transform_0, window_bounds = array<i64: 24, 32>}, {pipeline_mode = #tpu.pipeline_mode<synchronous>, transform_indices = @transform_1, window_bounds = array<i64: 32, 32>}, {pipeline_mode = #tpu.pipeline_mode<synchronous>, transform_indices = @transform_2, window_bounds = array<i64: 1, 32>}, {pipeline_mode = #tpu.pipeline_mode<synchronous>, transform_indices = @transform_3, window_bounds = array<i64: 32, 32>}, {pipeline_mode = #tpu.pipeline_mode<synchronous>, transform_indices = @transform_4, window_bounds = array<i64: 1, 32>}, {transform_indices = @transform_5, window_bounds = array<i64: 24, 32>}]} {
    %c0 = arith.constant 0 : index
    %c0_0 = arith.constant 0 : index
    %0 = vector.load %arg1[%c0, %c0_0] : memref<24x32xf32, #tpu.memory_space<vmem>>, vector<24x32xf32>
    %c0_1 = arith.constant 0 : index
    %c0_2 = arith.constant 0 : index
    %1 = vector.load %arg2[%c0_1, %c0_2] : memref<32x32xf32, #tpu.memory_space<vmem>>, vector<32x32xf32>
    %cst = arith.constant dense<0.000000e+00> : vector<24x32xf32>
    %2 = tpu.matmul %0, %1, %cst {dimension_numbers = #tpu.dot_dimension_numbers<[1], [0], [0], [1], [0, 0, 1, 1], [], []>} : vector<24x32xf32>, vector<32x32xf32>, vector<24x32xf32> -> vector<24x32xf32>
    %c0_3 = arith.constant 0 : index
    %c0_4 = arith.constant 0 : index
    %3 = vector.load %arg3[%c0_3, %c0_4] : memref<1x32xf32, #tpu.memory_space<vmem>>, vector<1x32xf32>
    %4 = vector.broadcast %3 : vector<1x32xf32> to vector<24x32xf32>
    %5 = arith.addf %2, %4 : vector<24x32xf32>
    %cst_5 = arith.constant 0.000000e+00 : f32
    %6 = vector.broadcast %cst_5 : f32 to vector<24x32xf32>
    %7 = arith.maximumf %5, %6 : vector<24x32xf32>
    %c0_6 = arith.constant 0 : index
    %c0_7 = arith.constant 0 : index
    %8 = vector.load %arg4[%c0_6, %c0_7] : memref<32x32xf32, #tpu.memory_space<vmem>>, vector<32x32xf32>
    %cst_8 = arith.constant dense<0.000000e+00> : vector<24x32xf32>
    %9 = tpu.matmul %7, %8, %cst_8 {dimension_numbers = #tpu.dot_dimension_numbers<[1], [0], [0], [1], [0, 0, 1, 1], [], []>} : vector<24x32xf32>, vector<32x32xf32>, vector<24x32xf32> -> vector<24x32xf32>
    %c0_9 = arith.constant 0 : index
    %c0_10 = arith.constant 0 : index
    %10 = vector.load %arg5[%c0_9, %c0_10] : memref<1x32xf32, #tpu.memory_space<vmem>>, vector<1x32xf32>
    %11 = vector.broadcast %10 : vector<1x32xf32> to vector<24x32xf32>
    %12 = arith.addf %9, %11 : vector<24x32xf32>
    %cst_11 = arith.constant 0.000000e+00 : f32
    %13 = vector.broadcast %cst_11 : f32 to vector<24x32xf32>
    %14 = arith.maximumf %12, %13 : vector<24x32xf32>
    %c0_12 = arith.constant 0 : index
    %c0_13 = arith.constant 0 : index
    %15 = vector.load %arg6[%c0_12, %c0_13] : memref<24x32xf32, #tpu.memory_space<vmem>>, vector<24x32xf32>
    tpu.vector_store %arg6[%c0_12, %c0_13], %14 {strides = array<i32>} : memref<24x32xf32, #tpu.memory_space<vmem>>, vector<24x32xf32>,
    return
  }
  func.func @transform_0(%arg0: i32) -> (i32, i32) {
    %c0_i32 = arith.constant 0 : i32
    %c0_i32_0 = arith.constant 0 : i32
    return %arg0, %c0_i32 : i32, i32
  }
  func.func @transform_1(%arg0: i32) -> (i32, i32) {
    %c0_i32 = arith.constant 0 : i32
    %c0_i32_0 = arith.constant 0 : i32
    %c0_i32_1 = arith.constant 0 : i32
    return %c0_i32, %c0_i32_0 : i32, i32
  }
  func.func @transform_2(%arg0: i32) -> (i32, i32) {
    %c0_i32 = arith.constant 0 : i32
    %c0_i32_0 = arith.constant 0 : i32
    %c0_i32_1 = arith.constant 0 : i32
    return %c0_i32, %c0_i32_0 : i32, i32
  }
  func.func @transform_3(%arg0: i32) -> (i32, i32) {
    %c0_i32 = arith.constant 0 : i32
    %c0_i32_0 = arith.constant 0 : i32
    %c0_i32_1 = arith.constant 0 : i32
    return %c0_i32, %c0_i32_0 : i32, i32
  }
  func.func @transform_4(%arg0: i32) -> (i32, i32) {
    %c0_i32 = arith.constant 0 : i32
    %c0_i32_0 = arith.constant 0 : i32
    %c0_i32_1 = arith.constant 0 : i32
    return %c0_i32, %c0_i32_0 : i32, i32
  }
  func.func @transform_5(%arg0: i32) -> (i32, i32) {
    %c0_i32 = arith.constant 0 : i32
    %c0_i32_0 = arith.constant 0 : i32
    return %arg0, %c0_i32 : i32, i32
  }
}

</mosaic_0001>

<bundles_post_ra>
// kernel: tpu_custom_call.1
= control target key start
LH: loop header
LB: loop body
LE: loop exit
PB: predicated region body
PF: predicated region fallthrough
CT: control target
= control target key end

     0   :  { %10 = vsyncpa [#allocation3], 0  ;;  %s526_s0 = inlined_call_operand.hbm [shape: f32[24,32], index: 0, kind: input, shape index: {}]   ;;  %s527_s1 = inlined_call_operand.hbm [shape: f32[32,32], index: 1, kind: input, shape index: {}]   ;;  %s528_s2 = inlined_call_operand.vmem [shape: f32[1,32], index: 2, kind: input, shape index: {}]   ;;  %s529_s3 = inlined_call_operand.hbm [shape: f32[32,32], index: 3, kind: input, shape index: {}]   ;;  %s530_s4 = inlined_call_operand.vmem [shape: f32[1,32], index: 4, kind: input, shape index: {}]   ;;  %s531_s5 = inlined_call_operand.hbm [shape: f32[24,32], index: 5, kind: output, shape index: {}]  }
   0x1   :  { %11 = vsyncpa [#allocation6], 0 }
   0x2   :  { %12 = vsyncpa [#allocation4], 0  ;;  %s443_s18 = smov [#allocation5]   ;;  %s444_s20 = smov [#allocation2]  }
   0x3   :  { %s30_s19 = sshll.u32 %s443_s18, 4  ;;  %s18_s21 = sshll.u32 %s444_s20, 4  ;;  %s31_s19 = int_to_ptr.vmem [resolvable:$true] %s30_s19  ;;  %s19_s21 = int_to_ptr.vmem [resolvable:$true] %s18_s21 }
   0x4   :  { %s365_s22 = scalar_lea.vmem %s31_s19, 512  ;;  %p370_p1 = scmp.lt.s32.totalorder %s31_s19, %s31_s19 }
   0x5   :  { %p366_p0 = scmp.ne.s32.totalorder %s31_s19, %s365_s22  ;;  %p371_p2 = scmp.lt.s32.totalorder %s365_s22, %s365_s22 }
   0x7   :  { %p372_p3 = por %p371_p2, %p370_p1 }
   0x9   :  { %p373_p4 = pnand %p372_p3, %p366_p0 }
   0xb   :  { %376 = shalt.err (!%p373_p4)
}
   0xc   :  { %s445_s23 = smov 128   ;;  %s446_s24 = smov 8  }
   0xd   :  { %36 = dma.hbm_to_vmem [thread:$0]  %s527_s1, 512, %s31_s19, [#allocation6], %s445_s23, %s445_s23, %s446_s24  }
   0xe   :  { %s385_s27 = scalar_lea.vmem %s19_s21, 384  ;;  %p390_p6 = scmp.lt.s32.totalorder %s19_s21, %s19_s21 }
   0xf   :  { %p386_p5 = scmp.ne.s32.totalorder %s19_s21, %s385_s27  ;;  %p391_p7 = scmp.lt.s32.totalorder %s385_s27, %s385_s27 }
  0x11   :  { %p392_p8 = por %p391_p7, %p390_p6 }
  0x13   :  { %p393_p9 = pnand %p392_p8, %p386_p5 }
  0x15   :  { %396 = shalt.err (!%p393_p9)
}
  0x16   :  { %24 = dma.hbm_to_vmem [thread:$0]  %s526_s0, 384, %s19_s21, [#allocation3], %s445_s23, %s445_s23, %s446_s24  }
  0x17   :  { %s447_s30 = smov [#allocation7]  }
  0x18   :  { %s44_s6 = sshll.u32 %s447_s30, 4  ;;  %s45_s6 = int_to_ptr.vmem [resolvable:$true] %s44_s6 }
  0x19   :  { %s405_s7 = scalar_lea.vmem %s45_s6, 512  ;;  %p410_p11 = scmp.lt.s32.totalorder %s45_s6, %s45_s6 }
  0x1a   :  { %p406_p10 = scmp.ne.s32.totalorder %s45_s6, %s405_s7  ;;  %p411_p12 = scmp.lt.s32.totalorder %s405_s7, %s405_s7 }
  0x1c   :  { %p412_p13 = por %p411_p12, %p410_p11 }
  0x1e   :  { %p413_p0 = pnand %p412_p13, %p406_p10 }
  0x20   :  { %416 = shalt.err (!%p413_p0)
}
  0x21   :  { %50 = dma.hbm_to_vmem [thread:$0]  %s529_s3, 512, %s45_s6, [#allocation6], %s445_s23, %s445_s23, %s446_s24  }
  0x22   :  { %437 = dma.done.wait [#allocation3], 384  }
  0x23   :  { %438 = vsyncadd [#allocation3], 4294966912 }
  0x24   :  { %439 = dma.done.wait [#allocation6], 1024  }
  0x25   :  { %440 = vsyncadd [#allocation6], 4294966272  ;;  %v448_v0 = vmov 0.0   ;;  %vm449_vm0 = vmmov 0   ;;  %v68_v1 = vld [vmem:[#allocation5 + $0x18] sm:$0xff]  ;;  %v67_v2 = vld [vmem:[#allocation5 + $0x10] sm:$0xff] }
  0x26   :  { %315 = vmatprep.subr.mxu0 %v448_v0  ;;  %323 = vmatprep.mubr.msk.f32.mxu0 %vm449_vm0, %v448_v0  ;;  %v66_v3 = vld [vmem:[#allocation5 + $0x8] sm:$0xff]  ;;  %v172_v4 = vld [vmem:[#allocation7 + $0x18] sm:$0xff]  ;;  %v65_v5 = vld [vmem:[#allocation5] sm:$0xff]  ;;  %vm76_vm1 = vcmask 261120   ;;  %s450_s10 = smov [#allocation8]  }
  0x27   :  { %332 = vmatprep.subr.mxu1 %v448_v0  ;;  %340 = vmatprep.mubr.msk.f32.mxu1 %vm449_vm0, %v448_v0  ;;  %v62_v6 = vld [vmem:[#allocation2] sm:$0xff]  ;;  %v63_v7 = vld [vmem:[#allocation2 + $0x8] sm:$0xff]  ;;  %v64_v8 = vld [vmem:[#allocation2 + $0x10] sm:$0xff]  ;;  %s280_s11 = sshll.u32 %s450_s10, 4  ;;  %s281_s11 = int_to_ptr.vmem [resolvable:$true] %s280_s11 }
  0x28   :  { %316 = vmatpush3.msra.mxu0 %v68_v1  ;;  %333 = vmatpush3.msra.mxu1 %v172_v4  ;;  %v171_v9 = vld [vmem:[#allocation7 + $0x10] sm:$0xff]  ;;  %v170_v10 = vld [vmem:[#allocation7 + $0x8] sm:$0xff]  ;;  %v169_v11 = vld [vmem:[#allocation7] sm:$0xff]  ;;  %p422_p2 = scmp.lt.s32.totalorder %s281_s11, %s281_s11 }
  0x29   :  { %317 = vmatprep.subr.mxu0 %v448_v0  ;;  %334 = vmatprep.subr.mxu1 %v448_v0  ;;  %v293_v12 = vld [vmem:[%s528_s2] ss:$0 sm:$0xff] }
  0x2a   :  { %318 = vmatpush3.msra.mxu0 %v67_v2  ;;  %335 = vmatpush3.msra.mxu1 %v171_v9  ;;  %v297_v25 = vld [vmem:[%s530_s4] ss:$0 sm:$0xff]  ;;  %s417_s4 = scalar_lea.vmem %s281_s11, 384 }
  0x2b   :  { %319 = vmatprep.subr.mxu0 %v448_v0  ;;  %336 = vmatprep.subr.mxu1 %v448_v0  ;;  %p418_p1 = scmp.ne.s32.totalorder %s281_s11, %s417_s4  ;;  %p423_p3 = scmp.lt.s32.totalorder %s417_s4, %s417_s4 }
  0x2c   :  { %320 = vmatpush3.msra.mxu0 %v66_v3  ;;  %337 = vmatpush3.msra.mxu1 %v170_v10 }
  0x2d   :  { %321 = vmatprep.subr.mxu0 %v448_v0  ;;  %338 = vmatprep.subr.mxu1 %v448_v0  ;;  %p424_p4 = por %p423_p3, %p422_p2 }
  0x2e   :  { %322 = vmatpush3.msra.mxu0 %v65_v5  ;;  %339 = vmatpush3.msra.mxu1 %v169_v11 }
  0x2f   :  { %324 = vmatmul.mubr.msk.f32.vlgmr.msra.gmra.mxu0 %vm76_vm1, %v62_v6  ;;  %p425_p5 = pnand %p424_p4, %p418_p1 }
  0x30   :  { %326 = vmatprep.mubr.msk.f32.mxu0 %vm449_vm0, %v448_v0 }
  0x33   :  { %327 = vmatmul.mubr.msk.f32.gmra.mxu0 %vm76_vm1, %v63_v7 }
  0x34   :  { %329 = vmatprep.mubr.msk.f32.mxu0 %vm449_vm0, %v448_v0 }
  0x37   :  { %330 = vmatmul.mubr.msk.f32.gmra.mxu0 %vm76_vm1, %v64_v8 }
  0xef   :  { %v152_v13 = vpop.f32.mrf.mxu0 }
  0xf0   :  { %v153_v14 = vadd.f32 %v293_v12, %v152_v13 }
  0xf1   :  { %v325_v15 = vpop.f32.mrf.mxu0 }
  0xf2   :  { %v166_v16 = vmax.f32 %v153_v14, 0.0 }
  0xf3   :  { %v157_v17 = vpop.f32.mrf.mxu0 }
  0xf4   :  { %v158_v18 = vadd.f32 %v293_v12, %v157_v17  ;;  %341 = vmatmul.mubr.msk.f32.vlgmr.msra.gmra.mxu1 %vm76_vm1, %v166_v16 }
  0xf5   :  { %v328_v19 = vpop.f32.mrf.mxu0  ;;  %343 = vmatprep.mubr.msk.f32.mxu1 %vm449_vm0, %v448_v0 }
  0xf6   :  { %v167_v20 = vmax.f32 %v158_v18, 0.0 }
  0xf7   :  { %v162_v21 = vpop.f32.mrf.mxu0 }
  0xf8   :  { %v163_v22 = vadd.f32 %v293_v12, %v162_v21  ;;  %344 = vmatmul.mubr.msk.f32.gmra.mxu1 %vm76_vm1, %v167_v20 }
  0xf9   :  { %v331_v23 = vpop.f32.mrf.mxu0  ;;  %346 = vmatprep.mubr.msk.f32.mxu1 %vm449_vm0, %v448_v0 }
  0xfa   :  { %v168_v24 = vmax.f32 %v163_v22, 0.0 }
  0xfc   :  { %347 = vmatmul.mubr.msk.f32.gmra.mxu1 %vm76_vm1, %v168_v24 }
 0x1b4   :  { %v255_v26 = vpop.f32.mrf.mxu1 }
 0x1b5   :  { %v256_v27 = vadd.f32 %v297_v25, %v255_v26 }
 0x1b6   :  { %v342_v28 = vpop.f32.mrf.mxu1 }
 0x1b7   :  { %v269_v29 = vmax.f32 %v256_v27, 0.0 }
 0x1b8   :  { %v260_v30 = vpop.f32.mrf.mxu1 }
 0x1b9   :  { %272 = vst.msk [vmem:[#allocation8] sm:$0xff] %vm76_vm1, %v269_v29  ;;  %v261_v31 = vadd.f32 %v297_v25, %v260_v30 }
 0x1ba   :  { %v345_v32 = vpop.f32.mrf.mxu1 }
 0x1bb   :  { %v270_v33 = vmax.f32 %v261_v31, 0.0 }
 0x1bc   :  { %v265_v34 = vpop.f32.mrf.mxu1 }
 0x1bd   :  { %273 = vst.msk [vmem:[#allocation8 + $0x8] sm:$0xff] %vm76_vm1, %v270_v33  ;;  %v266_v35 = vadd.f32 %v297_v25, %v265_v34 }
 0x1be   :  { %v348_v36 = vpop.f32.mrf.mxu1 }
 0x1bf   :  { %v271_v37 = vmax.f32 %v266_v35, 0.0 }
 0x1c1   :  { %274 = vst.msk [vmem:[#allocation8 + $0x10] sm:$0xff] %vm76_vm1, %v271_v37 }
 0x1c2   :  { %428 = shalt.err (!%p425_p5)
}
 0x1c3   :  { %286 = dma.vmem_to_hbm [thread:$0]  %s281_s11, 384, %s531_s5, [#allocation4], %s445_s23, %s445_s23, %s446_s24  }
 0x1c4   :  { %441 = dma.done.wait [#allocation4], 384  }
 0x1c5   :  { %442 = vsyncadd [#allocation4], 4294966912 }
 0x1c6   :  { %290 = vsyncpa [#allocation3], 1 }
 0x1c7   :  { %291 = vsyncpa [#allocation6], 1 }
 0x1c8   :  { %292 = vsyncpa [#allocation4], 1 }

</bundles_post_ra>
